<compile_context>
chip_gen: v6e
topology: v6e:2x2x1
jax: 0.10.0
libtpu: 0.0.40
codegen_flags: <defaults>
</compile_context>

<pallas_src>
import jax
import jax.numpy as jnp
from jax.experimental import pallas as pl
from jax.experimental.pallas import tpu as pltpu


# ----------------------------------------------------------------------------- helpers
def _round_up(x, m):
    return (x + m - 1) // m * m


def _cdiv(a, b):
    return -(-a // b)


def _pad2d(a, rows, cols):
    r, c = a.shape
    return jnp.pad(a, ((0, rows - r), (0, cols - c)))


def _choose_tiling(n, tile_n):
    """16-aligned row tiles, tight row padding, >=2 grid steps when there is enough work
    (keeps both v7x TensorCores busy under dimension_semantics=('parallel',))."""
    tile_n = max(16, _round_up(tile_n, 16))
    n16 = _round_up(max(n, 1), 16)
    num_steps = _cdiv(n16, tile_n)
    if num_steps == 1 and n16 >= 512:
        num_steps = 2
    tile_rows = _round_up(_cdiv(n16, num_steps), 16)
    n_pad = tile_rows * num_steps
    return tile_rows, n_pad, num_steps


# ----------------------------------------------------------------------------- kernel
def _build_mlp_kernel(depth, skip):
    """Fused MLP kernel: all `depth` layers applied to one row tile.

    Parameter refs come flattened after x_ref, per layer:
      regular layer : (W, bias)
      skip layer    : (W_top, W_bottom, bias)   # concat folded into two matmuls
    Last ref is the output tile.
    """

    def kernel(x_ref, *refs):
        out_ref = refs[-1]
        prm = refs[:-1]
        # x arrives f32 / un-padded in the feature dim; cast once in-kernel (saves a
        # full wrapper-side pad+cast HBM pass).  Kept for the skip connection.
        x0 = x_ref[...].astype(jnp.bfloat16)          # (TILE_N, in_dim)
        h = x0
        p = 0
        for i in range(depth):                        # static unroll (depth is small)
            if i == skip and skip > 0:
                w_h, w_x, b = prm[p], prm[p + 1], prm[p + 2]
                p += 3
                acc = jnp.dot(h, w_h[...], preferred_element_type=jnp.float32)
                acc = acc + jnp.dot(x0, w_x[...], preferred_element_type=jnp.float32)
            else:
                w, b = prm[p], prm[p + 1]
                p += 2
                acc = jnp.dot(h, w[...], preferred_element_type=jnp.float32)
            acc = jnp.maximum(acc + b[...], 0.0)      # bias + ReLU (every layer, per spec)
            if i + 1 < depth:
                h = acc.astype(jnp.bfloat16)
            else:
                out_ref[...] = acc.astype(out_ref.dtype)

    return kernel


def skippable_mlp_pallas_forward(x2d, weights, biases, skip, tile_n=1024):
    """x2d: (N, in_dim) f32; weights[i]: (Cin_i, Cout_i) f32 (skip layer Cin = hidden+in);
    biases[i]: (Cout_i,) f32. Returns (N, out_dim) f32."""
    n, in_dim = x2d.shape
    depth = len(weights)
    out_dim = weights[-1].shape[1]

    tile_rows, n_pad, num_steps = _choose_tiling(n, tile_n)

    # Rows-only pad, no dtype cast, no column pad (the bf16 cast happens in-kernel).
    x_p = x2d if n_pad == n else jnp.pad(x2d, ((0, n_pad - n), (0, 0)))

    # args + (block_shape, is_grid_invariant_param) descriptors.
    args = [x_p]
    specs_meta = [((tile_rows, in_dim), False)]
    flops = 0
    bytes_accessed = int(x_p.size) * 4

    cur_in = in_dim          # feature width of h entering layer i (before skip concat)
    cur_in_pad = in_dim      # layer 0 / skip-bottom see the raw (un-padded) x width
    max_pad = in_dim
    for i, (w, b) in enumerate(zip(weights, biases)):
        cout = w.shape[1]
        # Hidden activations stay lane-padded (128) for MXU/VPU friendliness; the FINAL
        # layer keeps its true width so the output HBM write isn't 128-lane amplified
        # and no post-call column slice is needed.
        cout_pad = cout if i == depth - 1 else _round_up(cout, 128)
        max_pad = max(max_pad, cout_pad)
        if i == skip and skip > 0:
            # Rows [0:cur_in] multiply the running activation, rows [cur_in:] the original x
            # (PyTorch cat order is [x, original_x]).
            w_h_p = _pad2d(w[:cur_in].astype(jnp.bfloat16), cur_in_pad, cout_pad)
            w_x_p = _pad2d(w[cur_in:].astype(jnp.bfloat16), in_dim, cout_pad)
            args += [w_h_p, w_x_p]
            specs_meta += [((cur_in_pad, cout_pad), True), ((in_dim, cout_pad), True)]
            flops += 2 * n_pad * (cur_in_pad + in_dim) * cout_pad
            bytes_accessed += (int(w_h_p.size) + int(w_x_p.size)) * 2
        else:
            w_p = _pad2d(w.astype(jnp.bfloat16), cur_in_pad, cout_pad)
            args.append(w_p)
            specs_meta.append(((cur_in_pad, cout_pad), True))
            flops += 2 * n_pad * cur_in_pad * cout_pad
            bytes_accessed += int(w_p.size) * 2
        b_p = jnp.pad(b.reshape(1, -1).astype(jnp.float32), ((0, 0), (0, cout_pad - cout)))
        args.append(b_p)
        specs_meta.append(((1, cout_pad), True))
        bytes_accessed += int(b_p.size) * 4
        cur_in, cur_in_pad = cout, cout_pad

    out_pad = cur_in_pad                       # == out_dim (final layer un-padded)
    bytes_accessed += n_pad * out_pad * 4

    # Advisory VMEM budget: single-buffered resident params + double-buffered x/out
    # tiles + a few f32 activation temporaries.
    param_bytes = sum(int(a.size) * a.dtype.itemsize for a in args[1:])
    io_bytes = 2 * tile_rows * (in_dim * 4 + out_pad * 4)
    act_bytes = 4 * tile_rows * max_pad * 4
    vmem_need = param_bytes + io_bytes + act_bytes + (2 << 20)
    try:
        vmem_cap = int(pltpu.get_tpu_info().vmem_capacity_bytes)
    except Exception:
        vmem_cap = 64 * 1024 * 1024            # conservative (v7x-sized) fallback
    vmem_limit = int(min(max(vmem_need, 32 * 1024 * 1024), int(0.8 * vmem_cap)))

    compiler_params = pltpu.CompilerParams(
        dimension_semantics=("parallel",),
        vmem_limit_bytes=vmem_limit)
    cost = pl.CostEstimate(flops=int(flops), transcendentals=0,
                           bytes_accessed=int(bytes_accessed))

    def _make_specs(single_buffer_params):
        specs = []
        for shape, is_param in specs_meta:
            if is_param:
                if single_buffer_params:
                    specs.append(pl.BlockSpec(shape, lambda g: (0, 0),
                                              pipeline_mode=pl.Buffered(1)))
                else:
                    specs.append(pl.BlockSpec(shape, lambda g: (0, 0)))
            else:
                specs.append(pl.BlockSpec(shape, lambda g: (g, 0)))
        return specs

    def _run(single_buffer_params):
        return pl.pallas_call(
            _build_mlp_kernel(depth, skip),
            out_shape=jax.ShapeDtypeStruct((n_pad, out_pad), jnp.float32),
            grid=(num_steps,),
            in_specs=_make_specs(single_buffer_params),
            out_specs=pl.BlockSpec((tile_rows, out_pad), lambda g: (g, 0)),
            compiler_params=compiler_params,
            cost_estimate=cost,
        )(*args)

    try:
        # Grid-invariant params single-buffered (their block index never changes).
        out = _run(True)
    except Exception:
        # Fallback for JAX builds where pipeline_mode=pl.Buffered(1) is unsupported.
        out = _run(False)

    if n_pad != n:
        out = out[:n]
    return out


# ----------------------------------------------------------------------------- modules
class PlainLinear:
    def __init__(self, in_dim, out_dim, key=None):
        key = jax.random.PRNGKey(0) if key is None else key
        kw, kb = jax.random.split(key)
        bound = 1.0 / (in_dim ** 0.5)
        self.weight_io = jax.random.uniform(kw, (in_dim, out_dim), jnp.float32, -bound, bound)
        self.bias = jax.random.uniform(kb, (out_dim,), jnp.float32, -bound, bound)


class ResLinear:
    """ResFields-style time-conditioned linear layer (lookup / frame_id mode)."""
    _registered = []

    @classmethod
    def enable_resfield(cls):
        for layer in cls._registered:
            layer.ignore_residuals = False

    @classmethod
    def disable_resfield(cls):
        for layer in cls._registered:
            layer.ignore_residuals = True

    def __init__(self, in_dim, out_dim, T_max, rank=16, key=None):
        key = jax.random.PRNGKey(0) if key is None else key
        kw, kb, kc, km = jax.random.split(key, 4)
        bound = 1.0 / (in_dim ** 0.5)
        self.weight_io = jax.random.uniform(kw, (in_dim, out_dim), jnp.float32, -bound, bound)
        self.bias = jax.random.uniform(kb, (out_dim,), jnp.float32, -bound, bound)
        self.coeffs = 0.01 * jax.random.normal(kc, (T_max, rank), jnp.float32)
        self.basis = 0.01 * jax.random.normal(km, (rank, in_dim, out_dim), jnp.float32)
        self.rank = rank
        self.span = T_max - 1
        self.ignore_residuals = False
        ResLinear._registered.append(self)

    def effective_weight(self, t):
        assert t <= self.span, 't should be less than T_max'
        if self.ignore_residuals:
            return self.weight_io              # residual path skipped entirely (no basis math)
        dw = jnp.einsum('r,rio->io', self.coeffs[t], self.basis)
        return self.weight_io + dw


class SkippableMLP:
    """JAX/Pallas re-implementation of the PyTorch SkippableMLP forward pass."""

    def __init__(self, in_dim, hidden_dim, out_dim, skip, depth, T_max=None, key=None):
        assert skip < depth, 'skip should be less than depth'
        key = jax.random.PRNGKey(0) if key is None else key
        keys = jax.random.split(key, depth)
        self.skip = skip
        self.depth = depth
        self.in_dim = in_dim
        self.resfield = T_max is not None
        self.layers = []
        for i in range(depth):
            sub_in = in_dim if i == 0 else hidden_dim
            sub_out = out_dim if i == depth - 1 else hidden_dim
            if i == skip and skip > 0:
                sub_in += in_dim
            if T_max is not None:
                self.layers.append(ResLinear(sub_in, sub_out, T_max, rank=16, key=keys[i]))
            else:
                self.layers.append(PlainLinear(sub_in, sub_out, key=keys[i]))

    def __call__(self, x, t=None):
        assert self.resfield == (t is not None), \
            't should be provided if and only if resfield is True'
        lead = x.shape[:-1]
        x2d = x.reshape(-1, x.shape[-1]).astype(jnp.float32)

        weights, biases = [], []
        for layer in self.layers:
            if self.resfield:
                unified_time = 2.0 * t / layer.span - 1.0
                # TODO(synk): unified_time only feeds interpolation-style ResField modes;
                # lookup/frame_id conditioning (W_t = W + coeffs[t] @ basis) is implemented.
                del unified_time
                weights.append(layer.effective_weight(t))   # W_t hoisted out of the kernel
            else:
                weights.append(layer.weight_io)
            biases.append(layer.bias)

        y2d = skippable_mlp_pallas_forward(x2d, weights, biases, self.skip)
        return y2d.reshape(*lead, y2d.shape[-1])


# ----------------------------------------------------------------------------- reference
def _reference(mlp, x, t=None):
    x2d = x.reshape(-1, x.shape[-1]).astype(jnp.float32)
    h = x2d
    x0 = x2d
    for i, layer in enumerate(mlp.layers):
        w = layer.effective_weight(t) if mlp.resfield else layer.weight_io
        if i == mlp.skip and mlp.skip > 0:
            h = jnp.concatenate([h, x0], axis=-1)
        h = jnp.maximum(h @ w + layer.bias, 0.0)
    return h.reshape(*x.shape[:-1], h.shape[-1])


# ----------------------------------------------------------------------------- test
if __name__ == "__main__":
    in_dim, hidden_dim, out_dim = 16, 32, 24
    depth, skip, T_max = 3, 1, 8
    batch, seq = 2, 8
    t = 3

    key = jax.random.PRNGKey(0)
    kmlp, kx = jax.random.split(key)

    mlp = SkippableMLP(in_dim, hidden_dim, out_dim, skip, depth, T_max=T_max, key=kmlp)
    x = jax.random.normal(kx, (batch, seq, in_dim), jnp.float32)

    # ResField-enabled path.
    y = jax.block_until_ready(mlp(x, t))
    y_ref = _reference(mlp, x, t)
    assert y.shape == (batch, seq, out_dim)
    assert jnp.allclose(y, y_ref, atol=3e-2, rtol=3e-2), float(jnp.max(jnp.abs(y - y_ref)))

    # ResField-disabled toggle (class-level, as in the PyTorch module).
    ResLinear.disable_resfield()
    y_off = jax.block_until_ready(mlp(x, t))
    y_off_ref = _reference(mlp, x, t)
    ResLinear.enable_resfield()
    assert jnp.allclose(y_off, y_off_ref, atol=3e-2, rtol=3e-2)

    # Plain (non-ResField) MLP path.
    mlp_plain = SkippableMLP(in_dim, hidden_dim, out_dim, skip, depth, T_max=None,
                             key=jax.random.PRNGKey(1))
    y_plain = jax.block_until_ready(mlp_plain(x))
    y_plain_ref = _reference(mlp_plain, x)
    assert jnp.allclose(y_plain, y_plain_ref, atol=3e-2, rtol=3e-2)

    print("KERNEL_OK")
</pallas_src>

<mosaic_0001>
module attributes {stable_mosaic.version = 11 : i64} {
  func.func @kernel(%arg0: i32, %arg1: memref<16x16xf32, #tpu.memory_space<vmem>>, %arg2: memref<16x128xbf16, #tpu.memory_space<vmem>>, %arg3: memref<1x128xf32, #tpu.memory_space<vmem>>, %arg4: memref<128x128xbf16, #tpu.memory_space<vmem>>, %arg5: memref<16x128xbf16, #tpu.memory_space<vmem>>, %arg6: memref<1x128xf32, #tpu.memory_space<vmem>>, %arg7: memref<128x24xbf16, #tpu.memory_space<vmem>>, %arg8: memref<1x24xf32, #tpu.memory_space<vmem>>, %arg9: memref<16x24xf32, #tpu.memory_space<vmem>>) attributes {dimension_semantics = [#tpu.dimension_semantics<parallel>], iteration_bounds = array<i64: 1>, scalar_prefetch = 0 : i64, scratch_operands = 0 : i64, tpu.core_type = #tpu.core_type<tc>, window_params = [{transform_indices = @transform_0, window_bounds = array<i64: 16, 16>}, {pipeline_mode = #tpu.pipeline_mode<synchronous>, transform_indices = @transform_1, window_bounds = array<i64: 16, 128>}, {pipeline_mode = #tpu.pipeline_mode<synchronous>, transform_indices = @transform_2, window_bounds = array<i64: 1, 128>}, {pipeline_mode = #tpu.pipeline_mode<synchronous>, transform_indices = @transform_3, window_bounds = array<i64: 128, 128>}, {pipeline_mode = #tpu.pipeline_mode<synchronous>, transform_indices = @transform_4, window_bounds = array<i64: 16, 128>}, {pipeline_mode = #tpu.pipeline_mode<synchronous>, transform_indices = @transform_5, window_bounds = array<i64: 1, 128>}, {pipeline_mode = #tpu.pipeline_mode<synchronous>, transform_indices = @transform_6, window_bounds = array<i64: 128, 24>}, {pipeline_mode = #tpu.pipeline_mode<synchronous>, transform_indices = @transform_7, window_bounds = array<i64: 1, 24>}, {transform_indices = @transform_8, window_bounds = array<i64: 16, 24>}]} {
    %c0 = arith.constant 0 : index
    %c0_0 = arith.constant 0 : index
    %0 = vector.load %arg1[%c0, %c0_0] : memref<16x16xf32, #tpu.memory_space<vmem>>, vector<16x16xf32>
    %1 = arith.truncf %0 : vector<16x16xf32> to vector<16x16xbf16>
    %c0_1 = arith.constant 0 : index
    %c0_2 = arith.constant 0 : index
    %2 = vector.load %arg2[%c0_1, %c0_2] : memref<16x128xbf16, #tpu.memory_space<vmem>>, vector<16x128xbf16>
    %cst = arith.constant dense<0.000000e+00> : vector<16x128xf32>
    %3 = tpu.matmul %1, %2, %cst {dimension_numbers = #tpu.dot_dimension_numbers<[1], [0], [0], [1], [0, 0, 1, 1], [], []>} : vector<16x16xbf16>, vector<16x128xbf16>, vector<16x128xf32> -> vector<16x128xf32>
    %c0_3 = arith.constant 0 : index
    %c0_4 = arith.constant 0 : index
    %4 = vector.load %arg3[%c0_3, %c0_4] : memref<1x128xf32, #tpu.memory_space<vmem>>, vector<1x128xf32>
    %5 = vector.broadcast %4 : vector<1x128xf32> to vector<16x128xf32>
    %6 = arith.addf %3, %5 : vector<16x128xf32>
    %cst_5 = arith.constant 0.000000e+00 : f32
    %7 = vector.broadcast %cst_5 : f32 to vector<16x128xf32>
    %8 = arith.maximumf %6, %7 : vector<16x128xf32>
    %9 = arith.truncf %8 : vector<16x128xf32> to vector<16x128xbf16>
    %c0_6 = arith.constant 0 : index
    %c0_7 = arith.constant 0 : index
    %10 = vector.load %arg4[%c0_6, %c0_7] : memref<128x128xbf16, #tpu.memory_space<vmem>>, vector<128x128xbf16>
    %cst_8 = arith.constant dense<0.000000e+00> : vector<16x128xf32>
    %11 = tpu.matmul %9, %10, %cst_8 {dimension_numbers = #tpu.dot_dimension_numbers<[1], [0], [0], [1], [0, 0, 1, 1], [], []>} : vector<16x128xbf16>, vector<128x128xbf16>, vector<16x128xf32> -> vector<16x128xf32>
    %c0_9 = arith.constant 0 : index
    %c0_10 = arith.constant 0 : index
    %12 = vector.load %arg5[%c0_9, %c0_10] : memref<16x128xbf16, #tpu.memory_space<vmem>>, vector<16x128xbf16>
    %cst_11 = arith.constant dense<0.000000e+00> : vector<16x128xf32>
    %13 = tpu.matmul %1, %12, %cst_11 {dimension_numbers = #tpu.dot_dimension_numbers<[1], [0], [0], [1], [0, 0, 1, 1], [], []>} : vector<16x16xbf16>, vector<16x128xbf16>, vector<16x128xf32> -> vector<16x128xf32>
    %14 = arith.addf %11, %13 : vector<16x128xf32>
    %c0_12 = arith.constant 0 : index
    %c0_13 = arith.constant 0 : index
    %15 = vector.load %arg6[%c0_12, %c0_13] : memref<1x128xf32, #tpu.memory_space<vmem>>, vector<1x128xf32>
    %16 = vector.broadcast %15 : vector<1x128xf32> to vector<16x128xf32>
    %17 = arith.addf %14, %16 : vector<16x128xf32>
    %cst_14 = arith.constant 0.000000e+00 : f32
    %18 = vector.broadcast %cst_14 : f32 to vector<16x128xf32>
    %19 = arith.maximumf %17, %18 : vector<16x128xf32>
    %20 = arith.truncf %19 : vector<16x128xf32> to vector<16x128xbf16>
    %c0_15 = arith.constant 0 : index
    %c0_16 = arith.constant 0 : index
    %21 = vector.load %arg7[%c0_15, %c0_16] : memref<128x24xbf16, #tpu.memory_space<vmem>>, vector<128x24xbf16>
    %cst_17 = arith.constant dense<0.000000e+00> : vector<16x24xf32>
    %22 = tpu.matmul %20, %21, %cst_17 {dimension_numbers = #tpu.dot_dimension_numbers<[1], [0], [0], [1], [0, 0, 1, 1], [], []>} : vector<16x128xbf16>, vector<128x24xbf16>, vector<16x24xf32> -> vector<16x24xf32>
    %c0_18 = arith.constant 0 : index
    %c0_19 = arith.constant 0 : index
    %23 = vector.load %arg8[%c0_18, %c0_19] : memref<1x24xf32, #tpu.memory_space<vmem>>, vector<1x24xf32>
    %24 = vector.broadcast %23 : vector<1x24xf32> to vector<16x24xf32>
    %25 = arith.addf %22, %24 : vector<16x24xf32>
    %cst_20 = arith.constant 0.000000e+00 : f32
    %26 = vector.broadcast %cst_20 : f32 to vector<16x24xf32>
    %27 = arith.maximumf %25, %26 : vector<16x24xf32>
    %c0_21 = arith.constant 0 : index
    %c0_22 = arith.constant 0 : index
    %28 = vector.load %arg9[%c0_21, %c0_22] : memref<16x24xf32, #tpu.memory_space<vmem>>, vector<16x24xf32>
    tpu.vector_store %arg9[%c0_21, %c0_22], %27 {strides = array<i32>} : memref<16x24xf32, #tpu.memory_space<vmem>>, vector<16x24xf32>,
    return
  }
  func.func @transform_0(%arg0: i32) -> (i32, i32) {
    %c0_i32 = arith.constant 0 : i32
    %c0_i32_0 = arith.constant 0 : i32
    return %arg0, %c0_i32 : i32, i32
  }
  func.func @transform_1(%arg0: i32) -> (i32, i32) {
    %c0_i32 = arith.constant 0 : i32
    %c0_i32_0 = arith.constant 0 : i32
    %c0_i32_1 = arith.constant 0 : i32
    return %c0_i32, %c0_i32_0 : i32, i32
  }
  func.func @transform_2(%arg0: i32) -> (i32, i32) {
    %c0_i32 = arith.constant 0 : i32
    %c0_i32_0 = arith.constant 0 : i32
    %c0_i32_1 = arith.constant 0 : i32
    return %c0_i32, %c0_i32_0 : i32, i32
  }
  func.func @transform_3(%arg0: i32) -> (i32, i32) {
    %c0_i32 = arith.constant 0 : i32
    %c0_i32_0 = arith.constant 0 : i32
    %c0_i32_1 = arith.constant 0 : i32
    return %c0_i32, %c0_i32_0 : i32, i32
  }
  func.func @transform_4(%arg0: i32) -> (i32, i32) {
    %c0_i32 = arith.constant 0 : i32
    %c0_i32_0 = arith.constant 0 : i32
    %c0_i32_1 = arith.constant 0 : i32
    return %c0_i32, %c0_i32_0 : i32, i32
  }
  func.func @transform_5(%arg0: i32) -> (i32, i32) {
    %c0_i32 = arith.constant 0 : i32
    %c0_i32_0 = arith.constant 0 : i32
    %c0_i32_1 = arith.constant 0 : i32
    return %c0_i32, %c0_i32_0 : i32, i32
  }
  func.func @transform_6(%arg0: i32) -> (i32, i32) {
    %c0_i32 = arith.constant 0 : i32
    %c0_i32_0 = arith.constant 0 : i32
    %c0_i32_1 = arith.constant 0 : i32
    return %c0_i32, %c0_i32_0 : i32, i32
  }
  func.func @transform_7(%arg0: i32) -> (i32, i32) {
    %c0_i32 = arith.constant 0 : i32
    %c0_i32_0 = arith.constant 0 : i32
    %c0_i32_1 = arith.constant 0 : i32
    return %c0_i32, %c0_i32_0 : i32, i32
  }
  func.func @transform_8(%arg0: i32) -> (i32, i32) {
    %c0_i32 = arith.constant 0 : i32
    %c0_i32_0 = arith.constant 0 : i32
    return %arg0, %c0_i32 : i32, i32
  }
}

module attributes {stable_mosaic.version = 11 : i64} {
  func.func @kernel(%arg0: i32, %arg1: memref<16x16xf32, #tpu.memory_space<vmem>>, %arg2: memref<16x128xbf16, #tpu.memory_space<vmem>>, %arg3: memref<1x128xf32, #tpu.memory_space<vmem>>, %arg4: memref<128x128xbf16, #tpu.memory_space<vmem>>, %arg5: memref<16x128xbf16, #tpu.memory_space<vmem>>, %arg6: memref<1x128xf32, #tpu.memory_space<vmem>>, %arg7: memref<128x24xbf16, #tpu.memory_space<vmem>>, %arg8: memref<1x24xf32, #tpu.memory_space<vmem>>, %arg9: memref<16x24xf32, #tpu.memory_space<vmem>>) attributes {dimension_semantics = [#tpu.dimension_semantics<parallel>], iteration_bounds = array<i64: 1>, scalar_prefetch = 0 : i64, scratch_operands = 0 : i64, tpu.core_type = #tpu.core_type<tc>, window_params = [{transform_indices = @transform_0, window_bounds = array<i64: 16, 16>}, {pipeline_mode = #tpu.pipeline_mode<synchronous>, transform_indices = @transform_1, window_bounds = array<i64: 16, 128>}, {pipeline_mode = #tpu.pipeline_mode<synchronous>, transform_indices = @transform_2, window_bounds = array<i64: 1, 128>}, {pipeline_mode = #tpu.pipeline_mode<synchronous>, transform_indices = @transform_3, window_bounds = array<i64: 128, 128>}, {pipeline_mode = #tpu.pipeline_mode<synchronous>, transform_indices = @transform_4, window_bounds = array<i64: 16, 128>}, {pipeline_mode = #tpu.pipeline_mode<synchronous>, transform_indices = @transform_5, window_bounds = array<i64: 1, 128>}, {pipeline_mode = #tpu.pipeline_mode<synchronous>, transform_indices = @transform_6, window_bounds = array<i64: 128, 24>}, {pipeline_mode = #tpu.pipeline_mode<synchronous>, transform_indices = @transform_7, window_bounds = array<i64: 1, 24>}, {transform_indices = @transform_8, window_bounds = array<i64: 16, 24>}]} {
    %c0 = arith.constant 0 : index
    %c0_0 = arith.constant 0 : index
    %0 = vector.load %arg1[%c0, %c0_0] : memref<16x16xf32, #tpu.memory_space<vmem>>, vector<16x16xf32>
    %1 = arith.truncf %0 : vector<16x16xf32> to vector<16x16xbf16>
    %c0_1 = arith.constant 0 : index
    %c0_2 = arith.constant 0 : index
    %2 = vector.load %arg2[%c0_1, %c0_2] : memref<16x128xbf16, #tpu.memory_space<vmem>>, vector<16x128xbf16>
    %cst = arith.constant dense<0.000000e+00> : vector<16x128xf32>
    %3 = tpu.matmul %1, %2, %cst {dimension_numbers = #tpu.dot_dimension_numbers<[1], [0], [0], [1], [0, 0, 1, 1], [], []>} : vector<16x16xbf16>, vector<16x128xbf16>, vector<16x128xf32> -> vector<16x128xf32>
    %c0_3 = arith.constant 0 : index
    %c0_4 = arith.constant 0 : index
    %4 = vector.load %arg3[%c0_3, %c0_4] : memref<1x128xf32, #tpu.memory_space<vmem>>, vector<1x128xf32>
    %5 = vector.broadcast %4 : vector<1x128xf32> to vector<16x128xf32>
    %6 = arith.addf %3, %5 : vector<16x128xf32>
    %cst_5 = arith.constant 0.000000e+00 : f32
    %7 = vector.broadcast %cst_5 : f32 to vector<16x128xf32>
    %8 = arith.maximumf %6, %7 : vector<16x128xf32>
    %9 = arith.truncf %8 : vector<16x128xf32> to vector<16x128xbf16>
    %c0_6 = arith.constant 0 : index
    %c0_7 = arith.constant 0 : index
    %10 = vector.load %arg4[%c0_6, %c0_7] : memref<128x128xbf16, #tpu.memory_space<vmem>>, vector<128x128xbf16>
    %cst_8 = arith.constant dense<0.000000e+00> : vector<16x128xf32>
    %11 = tpu.matmul %9, %10, %cst_8 {dimension_numbers = #tpu.dot_dimension_numbers<[1], [0], [0], [1], [0, 0, 1, 1], [], []>} : vector<16x128xbf16>, vector<128x128xbf16>, vector<16x128xf32> -> vector<16x128xf32>
    %c0_9 = arith.constant 0 : index
    %c0_10 = arith.constant 0 : index
    %12 = vector.load %arg5[%c0_9, %c0_10] : memref<16x128xbf16, #tpu.memory_space<vmem>>, vector<16x128xbf16>
    %cst_11 = arith.constant dense<0.000000e+00> : vector<16x128xf32>
    %13 = tpu.matmul %1, %12, %cst_11 {dimension_numbers = #tpu.dot_dimension_numbers<[1], [0], [0], [1], [0, 0, 1, 1], [], []>} : vector<16x16xbf16>, vector<16x128xbf16>, vector<16x128xf32> -> vector<16x128xf32>
    %14 = arith.addf %11, %13 : vector<16x128xf32>
    %c0_12 = arith.constant 0 : index
    %c0_13 = arith.constant 0 : index
    %15 = vector.load %arg6[%c0_12, %c0_13] : memref<1x128xf32, #tpu.memory_space<vmem>>, vector<1x128xf32>
    %16 = vector.broadcast %15 : vector<1x128xf32> to vector<16x128xf32>
    %17 = arith.addf %14, %16 : vector<16x128xf32>
    %cst_14 = arith.constant 0.000000e+00 : f32
    %18 = vector.broadcast %cst_14 : f32 to vector<16x128xf32>
    %19 = arith.maximumf %17, %18 : vector<16x128xf32>
    %20 = arith.truncf %19 : vector<16x128xf32> to vector<16x128xbf16>
    %c0_15 = arith.constant 0 : index
    %c0_16 = arith.constant 0 : index
    %21 = vector.load %arg7[%c0_15, %c0_16] : memref<128x24xbf16, #tpu.memory_space<vmem>>, vector<128x24xbf16>
    %cst_17 = arith.constant dense<0.000000e+00> : vector<16x24xf32>
    %22 = tpu.matmul %20, %21, %cst_17 {dimension_numbers = #tpu.dot_dimension_numbers<[1], [0], [0], [1], [0, 0, 1, 1], [], []>} : vector<16x128xbf16>, vector<128x24xbf16>, vector<16x24xf32> -> vector<16x24xf32>
    %c0_18 = arith.constant 0 : index
    %c0_19 = arith.constant 0 : index
    %23 = vector.load %arg8[%c0_18, %c0_19] : memref<1x24xf32, #tpu.memory_space<vmem>>, vector<1x24xf32>
    %24 = vector.broadcast %23 : vector<1x24xf32> to vector<16x24xf32>
    %25 = arith.addf %22, %24 : vector<16x24xf32>
    %cst_20 = arith.constant 0.000000e+00 : f32
    %26 = vector.broadcast %cst_20 : f32 to vector<16x24xf32>
    %27 = arith.maximumf %25, %26 : vector<16x24xf32>
    %c0_21 = arith.constant 0 : index
    %c0_22 = arith.constant 0 : index
    %28 = vector.load %arg9[%c0_21, %c0_22] : memref<16x24xf32, #tpu.memory_space<vmem>>, vector<16x24xf32>
    tpu.vector_store %arg9[%c0_21, %c0_22], %27 {strides = array<i32>} : memref<16x24xf32, #tpu.memory_space<vmem>>, vector<16x24xf32>,
    return
  }
  func.func @transform_0(%arg0: i32) -> (i32, i32) {
    %c0_i32 = arith.constant 0 : i32
    %c0_i32_0 = arith.constant 0 : i32
    return %arg0, %c0_i32 : i32, i32
  }
  func.func @transform_1(%arg0: i32) -> (i32, i32) {
    %c0_i32 = arith.constant 0 : i32
    %c0_i32_0 = arith.constant 0 : i32
    %c0_i32_1 = arith.constant 0 : i32
    return %c0_i32, %c0_i32_0 : i32, i32
  }
  func.func @transform_2(%arg0: i32) -> (i32, i32) {
    %c0_i32 = arith.constant 0 : i32
    %c0_i32_0 = arith.constant 0 : i32
    %c0_i32_1 = arith.constant 0 : i32
    return %c0_i32, %c0_i32_0 : i32, i32
  }
  func.func @transform_3(%arg0: i32) -> (i32, i32) {
    %c0_i32 = arith.constant 0 : i32
    %c0_i32_0 = arith.constant 0 : i32
    %c0_i32_1 = arith.constant 0 : i32
    return %c0_i32, %c0_i32_0 : i32, i32
  }
  func.func @transform_4(%arg0: i32) -> (i32, i32) {
    %c0_i32 = arith.constant 0 : i32
    %c0_i32_0 = arith.constant 0 : i32
    %c0_i32_1 = arith.constant 0 : i32
    return %c0_i32, %c0_i32_0 : i32, i32
  }
  func.func @transform_5(%arg0: i32) -> (i32, i32) {
    %c0_i32 = arith.constant 0 : i32
    %c0_i32_0 = arith.constant 0 : i32
    %c0_i32_1 = arith.constant 0 : i32
    return %c0_i32, %c0_i32_0 : i32, i32
  }
  func.func @transform_6(%arg0: i32) -> (i32, i32) {
    %c0_i32 = arith.constant 0 : i32
    %c0_i32_0 = arith.constant 0 : i32
    %c0_i32_1 = arith.constant 0 : i32
    return %c0_i32, %c0_i32_0 : i32, i32
  }
  func.func @transform_7(%arg0: i32) -> (i32, i32) {
    %c0_i32 = arith.constant 0 : i32
    %c0_i32_0 = arith.constant 0 : i32
    %c0_i32_1 = arith.constant 0 : i32
    return %c0_i32, %c0_i32_0 : i32, i32
  }
  func.func @transform_8(%arg0: i32) -> (i32, i32) {
    %c0_i32 = arith.constant 0 : i32
    %c0_i32_0 = arith.constant 0 : i32
    return %arg0, %c0_i32 : i32, i32
  }
}

</mosaic_0001>

<bundles_post_ra>
// kernel: tpu_custom_call.1
= control target key start
LH: loop header
LB: loop body
LE: loop exit
PB: predicated region body
PF: predicated region fallthrough
CT: control target
= control target key end

     0   :  { %13 = vsyncpa [#allocation3], 0  ;;  %s770_s0 = inlined_call_operand.vmem [shape: f32[16,16], index: 0, kind: input, shape index: {}]   ;;  %s771_s1 = inlined_call_operand.hbm [shape: bf16[16,128], index: 1, kind: input, shape index: {}]   ;;  %s772_s2 = inlined_call_operand.vmem [shape: f32[1,128], index: 2, kind: input, shape index: {}]   ;;  %s773_s3 = inlined_call_operand.vmem [shape: bf16[128,128], index: 3, kind: input, shape index: {}]   ;;  %s774_s4 = inlined_call_operand.hbm [shape: bf16[16,128], index: 4, kind: input, shape index: {}]   ;;  %s775_s5 = inlined_call_operand.vmem [shape: f32[1,128], index: 5, kind: input, shape index: {}]   ;;  %s776_s6 = inlined_call_operand.vmem [shape: bf16[128,24], index: 6, kind: input, shape index: {}]   ;;  %s777_s7 = inlined_call_operand.vmem [shape: f32[1,24], index: 7, kind: input, shape index: {}]   ;;  %s778_s8 = inlined_call_operand.hbm [shape: f32[16,24], index: 8, kind: output, shape index: {}]  }
   0x1   :  { %14 = vsyncpa [#allocation6], 0 }
   0x2   :  { %15 = vsyncpa [#allocation4], 0  ;;  %s616_s27 = smov [#allocation2]  }
   0x3   :  { %s23_s28 = sshll.u32 %s616_s27, 4  ;;  %s24_s28 = int_to_ptr.vmem [resolvable:$true] %s23_s28 }
   0x4   :  { %s558_s29 = scalar_lea.vmem %s24_s28, 128  ;;  %p563_p1 = scmp.lt.s32.totalorder %s24_s28, %s24_s28 }
   0x5   :  { %p559_p0 = scmp.ne.s32.totalorder %s24_s28, %s558_s29  ;;  %p564_p2 = scmp.lt.s32.totalorder %s558_s29, %s558_s29 }
   0x7   :  { %p565_p3 = por %p564_p2, %p563_p1 }
   0x9   :  { %p566_p4 = pnand %p565_p3, %p559_p0 }
   0xb   :  { %569 = shalt.err (!%p566_p4)
}
   0xc   :  { %s617_s30 = smov 64   ;;  %s618_s9 = smov 4  }
   0xd   :  { %29 = dma.hbm_to_vmem [thread:$0]  %s771_s1, 128, %s24_s28, [#allocation3], %s617_s30, %s617_s30, %s618_s9  }
   0xe   :  { %s619_s12 = smov [#allocation5]  }
   0xf   :  { %s39_s13 = sshll.u32 %s619_s12, 4  ;;  %s40_s13 = int_to_ptr.vmem [resolvable:$true] %s39_s13 }
  0x10   :  { %s578_s14 = scalar_lea.vmem %s40_s13, 128  ;;  %p583_p6 = scmp.lt.s32.totalorder %s40_s13, %s40_s13 }
  0x11   :  { %p579_p5 = scmp.ne.s32.totalorder %s40_s13, %s578_s14  ;;  %p584_p7 = scmp.lt.s32.totalorder %s578_s14, %s578_s14 }
  0x13   :  { %p585_p8 = por %p584_p7, %p583_p6 }
  0x15   :  { %p586_p9 = pnand %p585_p8, %p579_p5 }
  0x17   :  { %589 = shalt.err (!%p586_p9)
}
  0x18   :  { %45 = dma.hbm_to_vmem [thread:$0]  %s774_s4, 128, %s40_s13, [#allocation6], %s617_s30, %s617_s30, %s618_s9  }
  0x19   :  { %610 = dma.done.wait [#allocation3], 128  }
  0x1a   :  { %611 = vsyncadd [#allocation3], 4294967168 }
  0x1b   :  { %612 = dma.done.wait [#allocation6], 128  }
  0x1c   :  { %613 = vsyncadd [#allocation6], 4294967168  ;;  %v620_v0 = vmov 0.0   ;;  %vm621_vm0 = vmmov 0   ;;  %v532_v1 = vld [vmem:[#allocation2] sm:$0xff]   ;;  %v60_v3 = vld [vmem:[%s770_s0 + $0x8] sm:$0xff] }
  0x1d   :  { %471 = vmatprep.subr.bf16.mxu0 %v620_v0  ;;  %473 = vmatprep.mubr.msk.bf16.mxu0 %vm621_vm0, %v620_v0  ;;  %v59_v2 = vld [vmem:[%s770_s0] sm:$0xff]  ;;  %vm77_vm1 = vcmask 130048   ;;  %v533_v5 = vld [vmem:[%s773_s3 + $0x38] sm:$0xff]   ;;  %v534_v6 = vld [vmem:[%s773_s3 + $0x30] sm:$0xff]   ;;  %vm405_vm2 = vcmask 195584  }
  0x1e   :  { %477 = vmatprep.subr.bf16.mxu1 %v620_v0  ;;  %479 = vmatprep.mubr.msk.bf16.mxu1 %vm621_vm0, %v620_v0  ;;  %v61_v4 = vpack.c.bf16 %v60_v3, %v59_v2  ;;  %v535_v7 = vld [vmem:[%s773_s3 + $0x28] sm:$0xff]   ;;  %v536_v8 = vld [vmem:[%s773_s3 + $0x20] sm:$0xff]   ;;  %v537_v9 = vld [vmem:[%s773_s3 + $0x18] sm:$0xff]  }
  0x1f   :  { %472 = vmatpush3.bf16.msra.mxu0 %v532_v1  ;;  %v538_v10 = vld [vmem:[%s773_s3 + $0x10] sm:$0xff]   ;;  %v539_v11 = vld [vmem:[#allocation5] sm:$0xff]   ;;  %v541_v13 = vld [vmem:[%s773_s3] sm:$0xff]  }
  0x20   :  { %483 = vmatprep.subr.bf16.mxu0 %v620_v0  ;;  %478 = vmatpush3.bf16.msra.mxu1 %v539_v11  ;;  %v540_v12 = vld [vmem:[%s773_s3 + $0x8] sm:$0xff]   ;;  %v542_v14 = vld [vmem:[%s776_s6 + $0x38] sm:$0xff]   ;;  %v543_v15 = vld [vmem:[%s776_s6 + $0x30] sm:$0xff]  }
  0x21   :  { %503 = vmatprep.subr.bf16.mxu1 %v620_v0  ;;  %v544_v16 = vld [vmem:[%s776_s6 + $0x28] sm:$0xff]   ;;  %v545_v17 = vld [vmem:[%s776_s6 + $0x20] sm:$0xff]   ;;  %v546_v18 = vld [vmem:[%s776_s6 + $0x18] sm:$0xff]  }
  0x22   :  { %474 = vmatmul.mubr.msk.bf16.vlgmr.msra.gmra.mxu0 %vm77_vm1, %v61_v4  ;;  %v426_v19 = vld [vmem:[%s772_s2] ss:$0 sm:$0xff]  ;;  %v547_v33 = vld [vmem:[%s776_s6 + $0x10] sm:$0xff]   ;;  %v548_v34 = vld [vmem:[%s776_s6 + $0x8] sm:$0xff]  }
  0x23   :  { %484 = vmatpush3.bf16.msra.mxu0 %v533_v5  ;;  %499 = vmatprep.mubr.msk.bf16.mxu0 %vm621_vm0, %v620_v0  ;;  %v549_v35 = vld [vmem:[%s776_s6] sm:$0xff]  }
  0x24   :  { %485 = vmatprep.subr.bf16.mxu0 %v620_v0  ;;  %480 = vmatmul.mubr.msk.bf16.vlgmr.msra.gmra.mxu1 %vm77_vm1, %v61_v4  ;;  %v439_v38 = vld [vmem:[%s775_s5] ss:$0 sm:$0xff]  ;;  %s622_s5 = smov [#allocation7]  }
  0x25   :  { %519 = vmatprep.mubr.msk.bf16.mxu1 %vm621_vm0, %v620_v0  ;;  %504 = vmatpush3.bf16.msra.mxu1 %v542_v14  ;;  %v440_v48 = vld [vmem:[%s777_s7] ss:$0 sm:$0xff]  ;;  %s413_s6 = sshll.u32 %s622_s5, 4  ;;  %s414_s6 = int_to_ptr.vmem [resolvable:$true] %s413_s6 }
  0x26   :  { %505 = vmatprep.subr.bf16.mxu1 %v620_v0  ;;  %s590_s29 = scalar_lea.vmem %s414_s6, 256  ;;  %p595_p11 = scmp.lt.s32.totalorder %s414_s6, %s414_s6 }
  0x27   :  { %486 = vmatpush3.bf16.msra.mxu0 %v534_v6  ;;  %p591_p10 = scmp.ne.s32.totalorder %s414_s6, %s590_s29  ;;  %p596_p12 = scmp.lt.s32.totalorder %s590_s29, %s590_s29 }
  0x28   :  { %487 = vmatprep.subr.bf16.mxu0 %v620_v0 }
  0x29   :  { %506 = vmatpush3.bf16.msra.mxu1 %v543_v15  ;;  %p597_p13 = por %p596_p12, %p595_p11 }
  0x2a   :  { %507 = vmatprep.subr.bf16.mxu1 %v620_v0 }
  0x2b   :  { %488 = vmatpush3.bf16.msra.mxu0 %v535_v7  ;;  %p598_p0 = pnand %p597_p13, %p591_p10 }
  0x2c   :  { %489 = vmatprep.subr.bf16.mxu0 %v620_v0 }
  0x2d   :  { %508 = vmatpush3.bf16.msra.mxu1 %v544_v16 }
  0x2e   :  { %509 = vmatprep.subr.bf16.mxu1 %v620_v0 }
  0x2f   :  { %490 = vmatpush3.bf16.msra.mxu0 %v536_v8 }
  0x30   :  { %491 = vmatprep.subr.bf16.mxu0 %v620_v0 }
  0x31   :  { %510 = vmatpush3.bf16.msra.mxu1 %v545_v17 }
  0x32   :  { %511 = vmatprep.subr.bf16.mxu1 %v620_v0 }
  0x33   :  { %492 = vmatpush3.bf16.msra.mxu0 %v537_v9 }
  0x34   :  { %493 = vmatprep.subr.bf16.mxu0 %v620_v0 }
  0x35   :  { %512 = vmatpush3.bf16.msra.mxu1 %v546_v18 }
  0x36   :  { %513 = vmatprep.subr.bf16.mxu1 %v620_v0 }
  0x37   :  { %494 = vmatpush3.bf16.msra.mxu0 %v538_v10 }
  0x38   :  { %495 = vmatprep.subr.bf16.mxu0 %v620_v0 }
  0x39   :  { %514 = vmatpush3.bf16.msra.mxu1 %v547_v33 }
  0x3a   :  { %515 = vmatprep.subr.bf16.mxu1 %v620_v0 }
  0x3b   :  { %496 = vmatpush3.bf16.msra.mxu0 %v540_v12 }
  0x3c   :  { %497 = vmatprep.subr.bf16.mxu0 %v620_v0 }
  0x3d   :  { %516 = vmatpush3.bf16.msra.mxu1 %v548_v34 }
  0x3e   :  { %517 = vmatprep.subr.bf16.mxu1 %v620_v0 }
  0x3f   :  { %498 = vmatpush3.bf16.msra.mxu0 %v541_v13 }
  0x41   :  { %518 = vmatpush3.bf16.msra.mxu1 %v549_v35 }
  0xe2   :  { %v115_v20 = vpop.f32.mrf.mxu0 }
  0xe3   :  { %v116_v22 = vadd.f32 %v426_v19, %v115_v20 }
  0xe4   :  { %v475_v21 = vpop.f32.mrf.mxu0  ;;  %v183_v29 = vpop.f32.mrf.mxu1 }
  0xe5   :  { %v122_v26 = vmax.f32 %v116_v22, 0.0 }
  0xe6   :  { %v118_v23 = vpop.f32.mrf.mxu0  ;;  %v481_v30 = vpop.f32.mrf.mxu1 }
  0xe7   :  { %v119_v24 = vadd.f32 %v426_v19, %v118_v23 }
  0xe8   :  { %v476_v25 = vpop.f32.mrf.mxu0  ;;  %v186_v31 = vpop.f32.mrf.mxu1 }
  0xe9   :  { %v123_v27 = vmax.f32 %v119_v24, 0.0 }
  0xea   :  { %v482_v32 = vpop.f32.mrf.mxu1 }
  0xeb   :  { %v124_v28 = vpack.c.bf16 %v123_v27, %v122_v26 }
  0xed   :  { %500 = vmatmul.mubr.bf16.vlgmr.msra.gmra.mxu0 %v124_v28 }
 0x1ad   :  { %v272_v36 = vpop.f32.mrf.mxu0 }
 0x1ae   :  { %v273_v37 = vadd.f32 %v272_v36, %v183_v29 }
 0x1af   :  { %v501_v39 = vpop.f32.mrf.mxu0 }
 0x1b0   :  { %v286_v41 = vadd.f32 %v439_v38, %v273_v37 }
 0x1b1   :  { %v275_v40 = vpop.f32.mrf.mxu0 }
 0x1b2   :  { %v276_v42 = vadd.f32 %v275_v40, %v186_v31  ;;  %v288_v45 = vmax.f32 %v286_v41, 0.0 }
 0x1b3   :  { %v502_v43 = vpop.f32.mrf.mxu0 }
 0x1b4   :  { %v287_v44 = vadd.f32 %v439_v38, %v276_v42 }
 0x1b6   :  { %v289_v46 = vmax.f32 %v287_v44, 0.0 }
 0x1b8   :  { %v290_v47 = vpack.c.bf16 %v289_v46, %v288_v45 }
 0x1ba   :  { %520 = vmatmul.mubr.bf16.vlgmr.msra.gmra.mxu1 %v290_v47 }
 0x27a   :  { %v396_v49 = vpop.f32.mrf.mxu1 }
 0x27b   :  { %v397_v50 = vadd.f32 %v440_v48, %v396_v49 }
 0x27c   :  { %v521_v51 = vpop.f32.mrf.mxu1 }
 0x27d   :  { %v403_v52 = vmax.f32 %v397_v50, 0.0 }
 0x27e   :  { %v399_v53 = vpop.f32.mrf.mxu1 }
 0x27f   :  { %406 = vst.msk [vmem:[#allocation7] sm:$0xff] %vm405_vm2, %v403_v52  ;;  %v400_v54 = vadd.f32 %v440_v48, %v399_v53 }
 0x280   :  { %v522_v55 = vpop.f32.mrf.mxu1 }
 0x281   :  { %v404_v56 = vmax.f32 %v400_v54, 0.0 }
 0x283   :  { %407 = vst.msk [vmem:[#allocation7 + $0x8] sm:$0xff] %vm405_vm2, %v404_v56 }
 0x284   :  { %601 = shalt.err (!%p598_p0)
}
 0x285   :  { %s623_s7 = smov 128   ;;  %s624_s30 = smov 8  }
 0x286   :  { %419 = dma.vmem_to_hbm [thread:$0]  %s414_s6, 256, %s778_s8, [#allocation4], %s623_s7, %s623_s7, %s624_s30  }
 0x287   :  { %614 = dma.done.wait [#allocation4], 256  }
 0x288   :  { %615 = vsyncadd [#allocation4], 4294967040 }
 0x289   :  { %423 = vsyncpa [#allocation3], 1 }
 0x28a   :  { %424 = vsyncpa [#allocation6], 1 }
 0x28b   :  { %425 = vsyncpa [#allocation4], 1 }

// kernel: tpu_custom_call.1
= control target key start
LH: loop header
LB: loop body
LE: loop exit
PB: predicated region body
PF: predicated region fallthrough
CT: control target
= control target key end

     0   :  { %13 = vsyncpa [#allocation3], 0  ;;  %s770_s0 = inlined_call_operand.vmem [shape: f32[16,16], index: 0, kind: input, shape index: {}]   ;;  %s771_s1 = inlined_call_operand.hbm [shape: bf16[16,128], index: 1, kind: input, shape index: {}]   ;;  %s772_s2 = inlined_call_operand.vmem [shape: f32[1,128], index: 2, kind: input, shape index: {}]   ;;  %s773_s3 = inlined_call_operand.vmem [shape: bf16[128,128], index: 3, kind: input, shape index: {}]   ;;  %s774_s4 = inlined_call_operand.hbm [shape: bf16[16,128], index: 4, kind: input, shape index: {}]   ;;  %s775_s5 = inlined_call_operand.vmem [shape: f32[1,128], index: 5, kind: input, shape index: {}]   ;;  %s776_s6 = inlined_call_operand.vmem [shape: bf16[128,24], index: 6, kind: input, shape index: {}]   ;;  %s777_s7 = inlined_call_operand.vmem [shape: f32[1,24], index: 7, kind: input, shape index: {}]   ;;  %s778_s8 = inlined_call_operand.hbm [shape: f32[16,24], index: 8, kind: output, shape index: {}]  }
   0x1   :  { %14 = vsyncpa [#allocation6], 0 }
   0x2   :  { %15 = vsyncpa [#allocation4], 0  ;;  %s616_s27 = smov [#allocation2]  }
   0x3   :  { %s23_s28 = sshll.u32 %s616_s27, 4  ;;  %s24_s28 = int_to_ptr.vmem [resolvable:$true] %s23_s28 }
   0x4   :  { %s558_s29 = scalar_lea.vmem %s24_s28, 128  ;;  %p563_p1 = scmp.lt.s32.totalorder %s24_s28, %s24_s28 }
   0x5   :  { %p559_p0 = scmp.ne.s32.totalorder %s24_s28, %s558_s29  ;;  %p564_p2 = scmp.lt.s32.totalorder %s558_s29, %s558_s29 }
   0x7   :  { %p565_p3 = por %p564_p2, %p563_p1 }
   0x9   :  { %p566_p4 = pnand %p565_p3, %p559_p0 }
   0xb   :  { %569 = shalt.err (!%p566_p4)
}
   0xc   :  { %s617_s30 = smov 64   ;;  %s618_s9 = smov 4  }
   0xd   :  { %29 = dma.hbm_to_vmem [thread:$0]  %s771_s1, 128, %s24_s28, [#allocation3], %s617_s30, %s617_s30, %s618_s9  }
   0xe   :  { %s619_s12 = smov [#allocation5]  }
   0xf   :  { %s39_s13 = sshll.u32 %s619_s12, 4  ;;  %s40_s13 = int_to_ptr.vmem [resolvable:$true] %s39_s13 }
  0x10   :  { %s578_s14 = scalar_lea.vmem %s40_s13, 128  ;;  %p583_p6 = scmp.lt.s32.totalorder %s40_s13, %s40_s13 }
  0x11   :  { %p579_p5 = scmp.ne.s32.totalorder %s40_s13, %s578_s14  ;;  %p584_p7 = scmp.lt.s32.totalorder %s578_s14, %s578_s14 }
  0x13   :  { %p585_p8 = por %p584_p7, %p583_p6 }
  0x15   :  { %p586_p9 = pnand %p585_p8, %p579_p5 }
  0x17   :  { %589 = shalt.err (!%p586_p9)
}
  0x18   :  { %45 = dma.hbm_to_vmem [thread:$0]  %s774_s4, 128, %s40_s13, [#allocation6], %s617_s30, %s617_s30, %s618_s9  }
  0x19   :  { %610 = dma.done.wait [#allocation3], 128  }
  0x1a   :  { %611 = vsyncadd [#allocation3], 4294967168 }
  0x1b   :  { %612 = dma.done.wait [#allocation6], 128  }
  0x1c   :  { %613 = vsyncadd [#allocation6], 4294967168  ;;  %v620_v0 = vmov 0.0   ;;  %vm621_vm0 = vmmov 0   ;;  %v532_v1 = vld [vmem:[#allocation2] sm:$0xff]   ;;  %v60_v3 = vld [vmem:[%s770_s0 + $0x8] sm:$0xff] }
  0x1d   :  { %471 = vmatprep.subr.bf16.mxu0 %v620_v0  ;;  %473 = vmatprep.mubr.msk.bf16.mxu0 %vm621_vm0, %v620_v0  ;;  %v59_v2 = vld [vmem:[%s770_s0] sm:$0xff]  ;;  %vm77_vm1 = vcmask 130048   ;;  %v533_v5 = vld [vmem:[%s773_s3 + $0x38] sm:$0xff]   ;;  %v534_v6 = vld [vmem:[%s773_s3 + $0x30] sm:$0xff]   ;;  %vm405_vm2 = vcmask 195584  }
  0x1e   :  { %477 = vmatprep.subr.bf16.mxu1 %v620_v0  ;;  %479 = vmatprep.mubr.msk.bf16.mxu1 %vm621_vm0, %v620_v0  ;;  %v61_v4 = vpack.c.bf16 %v60_v3, %v59_v2  ;;  %v535_v7 = vld [vmem:[%s773_s3 + $0x28] sm:$0xff]   ;;  %v536_v8 = vld [vmem:[%s773_s3 + $0x20] sm:$0xff]   ;;  %v537_v9 = vld [vmem:[%s773_s3 + $0x18] sm:$0xff]  }
  0x1f   :  { %472 = vmatpush3.bf16.msra.mxu0 %v532_v1  ;;  %v538_v10 = vld [vmem:[%s773_s3 + $0x10] sm:$0xff]   ;;  %v539_v11 = vld [vmem:[#allocation5] sm:$0xff]   ;;  %v541_v13 = vld [vmem:[%s773_s3] sm:$0xff]  }
  0x20   :  { %483 = vmatprep.subr.bf16.mxu0 %v620_v0  ;;  %478 = vmatpush3.bf16.msra.mxu1 %v539_v11  ;;  %v540_v12 = vld [vmem:[%s773_s3 + $0x8] sm:$0xff]   ;;  %v542_v14 = vld [vmem:[%s776_s6 + $0x38] sm:$0xff]   ;;  %v543_v15 = vld [vmem:[%s776_s6 + $0x30] sm:$0xff]  }
  0x21   :  { %503 = vmatprep.subr.bf16.mxu1 %v620_v0  ;;  %v544_v16 = vld [vmem:[%s776_s6 + $0x28] sm:$0xff]   ;;  %v545_v17 = vld [vmem:[%s776_s6 + $0x20] sm:$0xff]   ;;  %v546_v18 = vld [vmem:[%s776_s6 + $0x18] sm:$0xff]  }
  0x22   :  { %474 = vmatmul.mubr.msk.bf16.vlgmr.msra.gmra.mxu0 %vm77_vm1, %v61_v4  ;;  %v426_v19 = vld [vmem:[%s772_s2] ss:$0 sm:$0xff]  ;;  %v547_v33 = vld [vmem:[%s776_s6 + $0x10] sm:$0xff]   ;;  %v548_v34 = vld [vmem:[%s776_s6 + $0x8] sm:$0xff]  }
  0x23   :  { %484 = vmatpush3.bf16.msra.mxu0 %v533_v5  ;;  %499 = vmatprep.mubr.msk.bf16.mxu0 %vm621_vm0, %v620_v0  ;;  %v549_v35 = vld [vmem:[%s776_s6] sm:$0xff]  }
  0x24   :  { %485 = vmatprep.subr.bf16.mxu0 %v620_v0  ;;  %480 = vmatmul.mubr.msk.bf16.vlgmr.msra.gmra.mxu1 %vm77_vm1, %v61_v4  ;;  %v439_v38 = vld [vmem:[%s775_s5] ss:$0 sm:$0xff]  ;;  %s622_s5 = smov [#allocation7]  }
  0x25   :  { %519 = vmatprep.mubr.msk.bf16.mxu1 %vm621_vm0, %v620_v0  ;;  %504 = vmatpush3.bf16.msra.mxu1 %v542_v14  ;;  %v440_v48 = vld [vmem:[%s777_s7] ss:$0 sm:$0xff]  ;;  %s413_s6 = sshll.u32 %s622_s5, 4  ;;  %s414_s6 = int_to_ptr.vmem [resolvable:$true] %s413_s6 }
  0x26   :  { %505 = vmatprep.subr.bf16.mxu1 %v620_v0  ;;  %s590_s29 = scalar_lea.vmem %s414_s6, 256  ;;  %p595_p11 = scmp.lt.s32.totalorder %s414_s6, %s414_s6 }
  0x27   :  { %486 = vmatpush3.bf16.msra.mxu0 %v534_v6  ;;  %p591_p10 = scmp.ne.s32.totalorder %s414_s6, %s590_s29  ;;  %p596_p12 = scmp.lt.s32.totalorder %s590_s29, %s590_s29 }
  0x28   :  { %487 = vmatprep.subr.bf16.mxu0 %v620_v0 }
  0x29   :  { %506 = vmatpush3.bf16.msra.mxu1 %v543_v15  ;;  %p597_p13 = por %p596_p12, %p595_p11 }
  0x2a   :  { %507 = vmatprep.subr.bf16.mxu1 %v620_v0 }
  0x2b   :  { %488 = vmatpush3.bf16.msra.mxu0 %v535_v7  ;;  %p598_p0 = pnand %p597_p13, %p591_p10 }
  0x2c   :  { %489 = vmatprep.subr.bf16.mxu0 %v620_v0 }
  0x2d   :  { %508 = vmatpush3.bf16.msra.mxu1 %v544_v16 }
  0x2e   :  { %509 = vmatprep.subr.bf16.mxu1 %v620_v0 }
  0x2f   :  { %490 = vmatpush3.bf16.msra.mxu0 %v536_v8 }
  0x30   :  { %491 = vmatprep.subr.bf16.mxu0 %v620_v0 }
  0x31   :  { %510 = vmatpush3.bf16.msra.mxu1 %v545_v17 }
  0x32   :  { %511 = vmatprep.subr.bf16.mxu1 %v620_v0 }
  0x33   :  { %492 = vmatpush3.bf16.msra.mxu0 %v537_v9 }
  0x34   :  { %493 = vmatprep.subr.bf16.mxu0 %v620_v0 }
  0x35   :  { %512 = vmatpush3.bf16.msra.mxu1 %v546_v18 }
  0x36   :  { %513 = vmatprep.subr.bf16.mxu1 %v620_v0 }
  0x37   :  { %494 = vmatpush3.bf16.msra.mxu0 %v538_v10 }
  0x38   :  { %495 = vmatprep.subr.bf16.mxu0 %v620_v0 }
  0x39   :  { %514 = vmatpush3.bf16.msra.mxu1 %v547_v33 }
  0x3a   :  { %515 = vmatprep.subr.bf16.mxu1 %v620_v0 }
  0x3b   :  { %496 = vmatpush3.bf16.msra.mxu0 %v540_v12 }
  0x3c   :  { %497 = vmatprep.subr.bf16.mxu0 %v620_v0 }
  0x3d   :  { %516 = vmatpush3.bf16.msra.mxu1 %v548_v34 }
  0x3e   :  { %517 = vmatprep.subr.bf16.mxu1 %v620_v0 }
  0x3f   :  { %498 = vmatpush3.bf16.msra.mxu0 %v541_v13 }
  0x41   :  { %518 = vmatpush3.bf16.msra.mxu1 %v549_v35 }
  0xe2   :  { %v115_v20 = vpop.f32.mrf.mxu0 }
  0xe3   :  { %v116_v22 = vadd.f32 %v426_v19, %v115_v20 }
  0xe4   :  { %v475_v21 = vpop.f32.mrf.mxu0  ;;  %v183_v29 = vpop.f32.mrf.mxu1 }
  0xe5   :  { %v122_v26 = vmax.f32 %v116_v22, 0.0 }
  0xe6   :  { %v118_v23 = vpop.f32.mrf.mxu0  ;;  %v481_v30 = vpop.f32.mrf.mxu1 }
  0xe7   :  { %v119_v24 = vadd.f32 %v426_v19, %v118_v23 }
  0xe8   :  { %v476_v25 = vpop.f32.mrf.mxu0  ;;  %v186_v31 = vpop.f32.mrf.mxu1 }
  0xe9   :  { %v123_v27 = vmax.f32 %v119_v24, 0.0 }
  0xea   :  { %v482_v32 = vpop.f32.mrf.mxu1 }
  0xeb   :  { %v124_v28 = vpack.c.bf16 %v123_v27, %v122_v26 }
  0xed   :  { %500 = vmatmul.mubr.bf16.vlgmr.msra.gmra.mxu0 %v124_v28 }
 0x1ad   :  { %v272_v36 = vpop.f32.mrf.mxu0 }
 0x1ae   :  { %v273_v37 = vadd.f32 %v272_v36, %v183_v29 }
 0x1af   :  { %v501_v39 = vpop.f32.mrf.mxu0 }
 0x1b0   :  { %v286_v41 = vadd.f32 %v439_v38, %v273_v37 }
 0x1b1   :  { %v275_v40 = vpop.f32.mrf.mxu0 }
 0x1b2   :  { %v276_v42 = vadd.f32 %v275_v40, %v186_v31  ;;  %v288_v45 = vmax.f32 %v286_v41, 0.0 }
 0x1b3   :  { %v502_v43 = vpop.f32.mrf.mxu0 }
 0x1b4   :  { %v287_v44 = vadd.f32 %v439_v38, %v276_v42 }
 0x1b6   :  { %v289_v46 = vmax.f32 %v287_v44, 0.0 }
 0x1b8   :  { %v290_v47 = vpack.c.bf16 %v289_v46, %v288_v45 }
 0x1ba   :  { %520 = vmatmul.mubr.bf16.vlgmr.msra.gmra.mxu1 %v290_v47 }
 0x27a   :  { %v396_v49 = vpop.f32.mrf.mxu1 }
 0x27b   :  { %v397_v50 = vadd.f32 %v440_v48, %v396_v49 }
 0x27c   :  { %v521_v51 = vpop.f32.mrf.mxu1 }
 0x27d   :  { %v403_v52 = vmax.f32 %v397_v50, 0.0 }
 0x27e   :  { %v399_v53 = vpop.f32.mrf.mxu1 }
 0x27f   :  { %406 = vst.msk [vmem:[#allocation7] sm:$0xff] %vm405_vm2, %v403_v52  ;;  %v400_v54 = vadd.f32 %v440_v48, %v399_v53 }
 0x280   :  { %v522_v55 = vpop.f32.mrf.mxu1 }
 0x281   :  { %v404_v56 = vmax.f32 %v400_v54, 0.0 }
 0x283   :  { %407 = vst.msk [vmem:[#allocation7 + $0x8] sm:$0xff] %vm405_vm2, %v404_v56 }
 0x284   :  { %601 = shalt.err (!%p598_p0)
}
 0x285   :  { %s623_s7 = smov 128   ;;  %s624_s30 = smov 8  }
 0x286   :  { %419 = dma.vmem_to_hbm [thread:$0]  %s414_s6, 256, %s778_s8, [#allocation4], %s623_s7, %s623_s7, %s624_s30  }
 0x287   :  { %614 = dma.done.wait [#allocation4], 256  }
 0x288   :  { %615 = vsyncadd [#allocation4], 4294967040 }
 0x289   :  { %423 = vsyncpa [#allocation3], 1 }
 0x28a   :  { %424 = vsyncpa [#allocation6], 1 }
 0x28b   :  { %425 = vsyncpa [#allocation4], 1 }

</bundles_post_ra>
